<compile_context>
chip_gen: v5e
topology: v5e:2x2
jax: 0.10.0
libtpu: 0.0.40
codegen_flags: <defaults>
</compile_context>

<pallas_src>
import functools
import math

import jax
import jax.numpy as jnp
from jax.experimental import pallas as pl
from jax.experimental.pallas import tpu as pltpu

INPUT_DIM = 398   # sequence length (S)
LATENT_DIM = 64   # feature dim (D), must be even

_LANES = 128


def _make_pe_table(seq_len, d_model):
    """PyTorch-equivalent PE buffer: (seq_len, d_model), float32.

    pe[p, 2k]   = sin(p * exp(-2k*ln(1e4)/D))
    pe[p, 2k+1] = cos(p * exp(-2k*ln(1e4)/D))
    """
    position = jnp.arange(seq_len, dtype=jnp.float32)[:, None]                 # (S, 1)
    div_term = jnp.exp(jnp.arange(0, d_model, 2, dtype=jnp.float32)
                       * (-math.log(10000.0) / d_model))                       # (D/2,)
    ang = position * div_term                                                  # (S, D/2)
    pe = jnp.stack([jnp.sin(ang), jnp.cos(ang)], axis=-1).reshape(seq_len, d_model)
    return pe


def _vmem_capacity_bytes():
    try:
        return int(pltpu.get_tpu_info().vmem_capacity_bytes)
    except Exception:
        return 64 * 1024 * 1024   # conservative fallback (v7x-sized)


def _num_tensorcores():
    """Heuristic: megacore (v4/v5p) and v7x expose 2 TensorCores per device."""
    try:
        kind = jax.devices()[0].device_kind.lower()
    except Exception:
        return 1
    if "v4" in kind or "v5p" in kind or "7" in kind:
        return 2
    return 1


def _pe_add_kernel(x_ref, pe_ref, o_ref):
    # x_ref/o_ref: (bblk, rblk, 128); pe_ref: (rblk, 128), broadcast over batch.
    # Pure bandwidth-bound elementwise add; PE block is resident across the
    # inner (batch) grid axis.
    o_ref[...] = x_ref[...] + pe_ref[...][None, :, :]


def make_sinusoidal_positional_encoding(input_dim, latent_dim):
    """Returns a jitted callable x -> x + pe (x is donated / updated in place)."""
    assert latent_dim % 2 == 0, "latent_dim must be even"
    pe = _make_pe_table(input_dim, latent_dim)   # the module's registered buffer

    @functools.partial(jax.jit, donate_argnums=0)
    def apply(x):
        B, S, D = x.shape
        assert S == input_dim and D == latent_dim, "shape mismatch with PE buffer"
        total = S * D
        assert total % _LANES == 0, "S*D must be a multiple of 128 for lane-dense layout"
        # TODO(synk): add a padding path for shapes where S*D % 128 != 0.
        L = total // _LANES
        itemsize = jnp.dtype(x.dtype).itemsize

        vmem_cap = _vmem_capacity_bytes()
        num_cores = _num_tensorcores()

        row_bytes = _LANES * itemsize
        # ~vmem/16 per block: ~8 MiB on 128 MiB parts (v5e/v6e), ~4 MiB on v7x.
        block_budget = max(vmem_cap // 16, 512 * 1024)
        rows_budget = max(8, block_budget // row_bytes)

        if L > rows_budget:
            # Row-block within a single batch element (large S*D): multiple-of-8
            # sublane blocks, many uniform grid steps for pipeline depth / 2 TCs.
            bblk = 1
            rblk = (rows_budget // 8) * 8
        else:
            # Whole (S, D) plane per batch element fits: block over batch.
            rblk = L
            cap = min(B, max(1, rows_budget // max(L, 1)))
            if num_cores >= 2 and B >= 2:
                # Keep >= num_cores batch steps only on multi-TC chips.
                cap = min(cap, max(1, B // num_cores))
            bblk = max(d for d in range(1, cap + 1) if B % d == 0)

        n_rblocks = pl.cdiv(L, rblk)
        n_bblocks = B // bblk

        x_flat = x.reshape(B, L, _LANES)
        pe_flat = pe.reshape(L, _LANES).astype(x.dtype)

        block_bytes = bblk * rblk * row_bytes
        pe_block_bytes = rblk * row_bytes
        vmem_needed = 4 * block_bytes + 2 * pe_block_bytes + (2 << 20)
        vmem_limit = int(min(max(vmem_needed, 16 << 20), vmem_cap * 3 // 4))

        out_flat = pl.pallas_call(
            _pe_add_kernel,
            out_shape=jax.ShapeDtypeStruct((B, L, _LANES), x.dtype),
            grid=(n_rblocks, n_bblocks),   # batch innermost -> PE block stays resident
            in_specs=[
                pl.BlockSpec((bblk, rblk, _LANES), lambda r, b: (b, r, 0)),
                pl.BlockSpec((rblk, _LANES), lambda r, b: (r, 0)),
            ],
            out_specs=pl.BlockSpec((bblk, rblk, _LANES), lambda r, b: (b, r, 0)),
            input_output_aliases={0: 0},
            compiler_params=pltpu.CompilerParams(
                dimension_semantics=("parallel", "parallel"),
                vmem_limit_bytes=vmem_limit,
            ),
        )(x_flat, pe_flat)
        return out_flat.reshape(B, S, D)

    return apply


if __name__ == "__main__":
    key = jax.random.PRNGKey(0)
    B = 2
    x = jax.random.normal(key, (B, INPUT_DIM, LATENT_DIM), dtype=jnp.float32)

    # Reference (computed and materialized BEFORE the donating kernel call,
    # since x's buffer is donated / clobbered by the in-place update).
    pe_ref = _make_pe_table(INPUT_DIM, LATENT_DIM)
    ref = jax.block_until_ready(x + pe_ref[None, :, :])

    pos_enc = make_sinusoidal_positional_encoding(INPUT_DIM, LATENT_DIM)
    out = jax.block_until_ready(pos_enc(x))

    assert out.shape == (B, INPUT_DIM, LATENT_DIM)
    assert jnp.allclose(out, ref, atol=1e-5, rtol=1e-5), "mismatch vs reference"

    print("KERNEL_OK")
</pallas_src>

<mosaic_0001>
module attributes {stable_mosaic.version = 11 : i64} {
  func.func @_pe_add_kernel(%arg0: i32, %arg1: i32, %arg2: memref<2x199x128xf32, #tpu.memory_space<vmem>>, %arg3: memref<199x128xf32, #tpu.memory_space<vmem>>, %arg4: memref<2x199x128xf32, #tpu.memory_space<vmem>>) attributes {dimension_semantics = [#tpu.dimension_semantics<parallel>, #tpu.dimension_semantics<parallel>], iteration_bounds = array<i64: 1, 1>, scalar_prefetch = 0 : i64, scratch_operands = 0 : i64, tpu.core_type = #tpu.core_type<tc>, window_params = [{transform_indices = @transform_0, window_bounds = array<i64: 2, 199, 128>}, {transform_indices = @transform_1, window_bounds = array<i64: 199, 128>}, {transform_indices = @transform_2, window_bounds = array<i64: 2, 199, 128>}]} {
    %c0 = arith.constant 0 : index
    %c0_0 = arith.constant 0 : index
    %c0_1 = arith.constant 0 : index
    %0 = vector.load %arg2[%c0, %c0_0, %c0_1] : memref<2x199x128xf32, #tpu.memory_space<vmem>>, vector<2x199x128xf32>
    %c0_2 = arith.constant 0 : index
    %c0_3 = arith.constant 0 : index
    %1 = vector.load %arg3[%c0_2, %c0_3] : memref<199x128xf32, #tpu.memory_space<vmem>>, vector<199x128xf32>
    %2 = vector.shape_cast %1 : vector<199x128xf32> to vector<1x199x128xf32>
    %3 = vector.broadcast %2 : vector<1x199x128xf32> to vector<2x199x128xf32>
    %4 = arith.addf %0, %3 : vector<2x199x128xf32>
    %c0_4 = arith.constant 0 : index
    %c0_5 = arith.constant 0 : index
    %c0_6 = arith.constant 0 : index
    %5 = vector.load %arg4[%c0_4, %c0_5, %c0_6] : memref<2x199x128xf32, #tpu.memory_space<vmem>>, vector<2x199x128xf32>
    tpu.vector_store %arg4[%c0_4, %c0_5, %c0_6], %4 {strides = array<i32>} : memref<2x199x128xf32, #tpu.memory_space<vmem>>, vector<2x199x128xf32>,
    return
  }
  func.func @transform_0(%arg0: i32, %arg1: i32) -> (i32, i32, i32) {
    %c0_i32 = arith.constant 0 : i32
    %c0_i32_0 = arith.constant 0 : i32
    return %arg1, %arg0, %c0_i32 : i32, i32, i32
  }
  func.func @transform_1(%arg0: i32, %arg1: i32) -> (i32, i32) {
    %c0_i32 = arith.constant 0 : i32
    %c0_i32_0 = arith.constant 0 : i32
    return %arg0, %c0_i32 : i32, i32
  }
  func.func @transform_2(%arg0: i32, %arg1: i32) -> (i32, i32, i32) {
    %c0_i32 = arith.constant 0 : i32
    %c0_i32_0 = arith.constant 0 : i32
    return %arg1, %arg0, %c0_i32 : i32, i32, i32
  }
}

</mosaic_0001>

<bundles_post_ra>
// kernel: apply.1
= control target key start
LH: loop header
LB: loop body
LE: loop exit
PB: predicated region body
PF: predicated region fallthrough
CT: control target
= control target key end

     0   :  { %s680_s0 = inlined_call_operand.vmem [shape: f32[2,199,128], index: 0, kind: input, shape index: {}, may-alias: {0,2}]   ;;  %s681_s1 = inlined_call_operand.vmem [shape: f32[199,128], index: 1, kind: input, shape index: {}]   ;;  %s682_s2 = inlined_call_operand.vmem [shape: f32[2,199,128], index: 2, kind: output, shape index: {}, may-alias: {0,2}]  }
   0x1   :  { %v11_v0 = vld [vmem:[%s680_s0] sm:$0xff]  ;;  %v12_v2 = vld [vmem:[%s680_s0 + $0x8] sm:$0xff]  ;;  %v13_v5 = vld [vmem:[%s680_s0 + $0x10] sm:$0xff] }
   0x2   :  { %v211_v1 = vld [vmem:[%s681_s1] sm:$0xff]  ;;  %v220_v4 = vld [vmem:[%s681_s1 + $0x8] sm:$0xff]  ;;  %v228_v6 = vld [vmem:[%s681_s1 + $0x10] sm:$0xff] }
   0x3   :  { %v86_v3 = vadd.f32 %v211_v1, %v11_v0  ;;  %v87_v7 = vadd.f32 %v220_v4, %v12_v2  ;;  %v88_v8 = vadd.f32 %v228_v6, %v13_v5  ;;  %v14_v9 = vld [vmem:[%s680_s0 + $0x18] sm:$0xff]  ;;  %v15_v11 = vld [vmem:[%s680_s0 + $0x20] sm:$0xff]  ;;  %v258_v15 = vld [vmem:[%s681_s1 + $0x28] sm:$0xff] }
   0x4   :  { %v238_v10 = vld [vmem:[%s681_s1 + $0x18] sm:$0xff]  ;;  %v250_v13 = vld [vmem:[%s681_s1 + $0x20] sm:$0xff]  ;;  %v271_v19 = vld [vmem:[%s681_s1 + $0x30] sm:$0xff] }
   0x5   :  { %136 = vst [vmem:[%s682_s2] sm:$0xff] %v86_v3  ;;  %v89_v12 = vadd.f32 %v238_v10, %v14_v9  ;;  %v90_v16 = vadd.f32 %v250_v13, %v15_v11  ;;  %v283_v22 = vld [vmem:[%s681_s1 + $0x38] sm:$0xff]  ;;  %v291_v24 = vld [vmem:[%s681_s1 + $0x40] sm:$0xff]  ;;  %v303_v27 = vld [vmem:[%s681_s1 + $0x48] sm:$0xff] }
   0x6   :  { %v315_v30 = vld [vmem:[%s681_s1 + $0x50] sm:$0xff]  ;;  %v323_v32 = vld [vmem:[%s681_s1 + $0x58] sm:$0xff]  ;;  %v335_v35 = vld [vmem:[%s681_s1 + $0x60] sm:$0xff] }
   0x7   :  { %v347_v38 = vld [vmem:[%s681_s1 + $0x68] sm:$0xff]  ;;  %v359_v41 = vld [vmem:[%s681_s1 + $0x70] sm:$0xff]  ;;  %v371_v44 = vld [vmem:[%s681_s1 + $0x78] sm:$0xff] }
   0x8   :  { %v383_v47 = vld [vmem:[%s681_s1 + $0x80] sm:$0xff]  ;;  %v395_v50 = vld [vmem:[%s681_s1 + $0x88] sm:$0xff]  ;;  %v407_v53 = vld [vmem:[%s681_s1 + $0x90] sm:$0xff] }
   0x9   :  { %v419_v56 = vld [vmem:[%s681_s1 + $0x98] sm:$0xff]  ;;  %v431_v59 = vld [vmem:[%s681_s1 + $0xa0] sm:$0xff]  ;;  %v443_v62 = vld [vmem:[%s681_s1 + $0xa8] sm:$0xff] }
   0xa   :  { %v455_v2 = vld [vmem:[%s681_s1 + $0xb0] sm:$0xff]  ;;  %v479_v11 = vld [vmem:[%s681_s1 + $0xc0] sm:$0x7f] }
   0xc   :  { %v16_v14 = vld [vmem:[%s680_s0 + $0x28] sm:$0xff] }
   0xd   :  { %137 = vst [vmem:[%s682_s2 + $0x8] sm:$0xff] %v87_v7  ;;  %v91_v17 = vadd.f32 %v258_v15, %v16_v14  ;;  %v467_v7 = vld [vmem:[%s681_s1 + $0xb8] sm:$0xff] }
  0x14   :  { %v17_v18 = vld [vmem:[%s680_s0 + $0x30] sm:$0xff]  ;;  %v18_v20 = vld [vmem:[%s680_s0 + $0x38] sm:$0xff] }
  0x15   :  { %138 = vst [vmem:[%s682_s2 + $0x10] sm:$0xff] %v88_v8  ;;  %v92_v21 = vadd.f32 %v271_v19, %v17_v18  ;;  %v93_v25 = vadd.f32 %v283_v22, %v18_v20 }
  0x1c   :  { %v19_v23 = vld [vmem:[%s680_s0 + $0x40] sm:$0xff] }
  0x1d   :  { %139 = vst [vmem:[%s682_s2 + $0x18] sm:$0xff] %v89_v12  ;;  %v94_v29 = vadd.f32 %v291_v24, %v19_v23 }
  0x24   :  { %v20_v26 = vld [vmem:[%s680_s0 + $0x48] sm:$0xff]  ;;  %v21_v28 = vld [vmem:[%s680_s0 + $0x50] sm:$0xff] }
  0x25   :  { %140 = vst [vmem:[%s682_s2 + $0x20] sm:$0xff] %v90_v16  ;;  %v95_v33 = vadd.f32 %v303_v27, %v20_v26  ;;  %v96_v36 = vadd.f32 %v315_v30, %v21_v28 }
  0x2c   :  { %v22_v31 = vld [vmem:[%s680_s0 + $0x58] sm:$0xff] }
  0x2d   :  { %141 = vst [vmem:[%s682_s2 + $0x28] sm:$0xff] %v91_v17  ;;  %v97_v39 = vadd.f32 %v323_v32, %v22_v31 }
  0x34   :  { %v23_v34 = vld [vmem:[%s680_s0 + $0x60] sm:$0xff] }
  0x35   :  { %142 = vst [vmem:[%s682_s2 + $0x30] sm:$0xff] %v92_v21  ;;  %v98_v42 = vadd.f32 %v335_v35, %v23_v34 }
  0x3c   :  { %v24_v37 = vld [vmem:[%s680_s0 + $0x68] sm:$0xff] }
  0x3d   :  { %143 = vst [vmem:[%s682_s2 + $0x38] sm:$0xff] %v93_v25  ;;  %v99_v45 = vadd.f32 %v347_v38, %v24_v37 }
  0x44   :  { %v25_v40 = vld [vmem:[%s680_s0 + $0x70] sm:$0xff] }
  0x45   :  { %144 = vst [vmem:[%s682_s2 + $0x40] sm:$0xff] %v94_v29  ;;  %v100_v48 = vadd.f32 %v359_v41, %v25_v40 }
  0x4c   :  { %v26_v43 = vld [vmem:[%s680_s0 + $0x78] sm:$0xff] }
  0x4d   :  { %145 = vst [vmem:[%s682_s2 + $0x48] sm:$0xff] %v95_v33  ;;  %v101_v51 = vadd.f32 %v371_v44, %v26_v43 }
  0x54   :  { %v27_v46 = vld [vmem:[%s680_s0 + $0x80] sm:$0xff] }
  0x55   :  { %146 = vst [vmem:[%s682_s2 + $0x50] sm:$0xff] %v96_v36  ;;  %v102_v54 = vadd.f32 %v383_v47, %v27_v46 }
  0x5c   :  { %v28_v49 = vld [vmem:[%s680_s0 + $0x88] sm:$0xff] }
  0x5d   :  { %147 = vst [vmem:[%s682_s2 + $0x58] sm:$0xff] %v97_v39  ;;  %v103_v57 = vadd.f32 %v395_v50, %v28_v49 }
  0x64   :  { %v29_v52 = vld [vmem:[%s680_s0 + $0x90] sm:$0xff] }
  0x65   :  { %148 = vst [vmem:[%s682_s2 + $0x60] sm:$0xff] %v98_v42  ;;  %v104_v60 = vadd.f32 %v407_v53, %v29_v52 }
  0x6c   :  { %v30_v55 = vld [vmem:[%s680_s0 + $0x98] sm:$0xff] }
  0x6d   :  { %149 = vst [vmem:[%s682_s2 + $0x68] sm:$0xff] %v99_v45  ;;  %v105_v63 = vadd.f32 %v419_v56, %v30_v55 }
  0x74   :  { %v31_v58 = vld [vmem:[%s680_s0 + $0xa0] sm:$0xff] }
  0x75   :  { %150 = vst [vmem:[%s682_s2 + $0x70] sm:$0xff] %v100_v48  ;;  %v106_v3 = vadd.f32 %v431_v59, %v31_v58 }
  0x7c   :  { %v32_v61 = vld [vmem:[%s680_s0 + $0xa8] sm:$0xff] }
  0x7d   :  { %151 = vst [vmem:[%s682_s2 + $0x78] sm:$0xff] %v101_v51  ;;  %v107_v8 = vadd.f32 %v443_v62, %v32_v61 }
  0x84   :  { %v33_v0 = vld [vmem:[%s680_s0 + $0xb0] sm:$0xff] }
  0x85   :  { %152 = vst [vmem:[%s682_s2 + $0x80] sm:$0xff] %v102_v54  ;;  %v108_v12 = vadd.f32 %v455_v2, %v33_v0 }
  0x8c   :  { %v34_v5 = vld [vmem:[%s680_s0 + $0xb8] sm:$0xff] }
  0x8d   :  { %153 = vst [vmem:[%s682_s2 + $0x88] sm:$0xff] %v103_v57  ;;  %v109_v16 = vadd.f32 %v467_v7, %v34_v5 }
  0x94   :  { %v35_v9 = vld [vmem:[%s680_s0 + $0xc0] sm:$0x7f] }
  0x95   :  { %154 = vst [vmem:[%s682_s2 + $0x90] sm:$0xff] %v104_v60  ;;  %v110_v18 = vadd.f32 %v479_v11, %v35_v9 }
  0x9c   :  { %v36_v14 = vld [vmem:[%s680_s0 + $0xc8] sm:$0xff] }
  0x9d   :  { %155 = vst [vmem:[%s682_s2 + $0x98] sm:$0xff] %v105_v63  ;;  %v111_v21 = vadd.f32 %v211_v1, %v36_v14 }
  0xa4   :  { %v37_v17 = vld [vmem:[%s680_s0 + $0xd0] sm:$0xff] }
  0xa5   :  { %156 = vst [vmem:[%s682_s2 + $0xa0] sm:$0xff] %v106_v3  ;;  %v112_v25 = vadd.f32 %v220_v4, %v37_v17 }
  0xac   :  { %v38_v20 = vld [vmem:[%s680_s0 + $0xd8] sm:$0xff] }
  0xad   :  { %157 = vst [vmem:[%s682_s2 + $0xa8] sm:$0xff] %v107_v8  ;;  %v113_v1 = vadd.f32 %v228_v6, %v38_v20 }
  0xb4   :  { %v39_v23 = vld [vmem:[%s680_s0 + $0xe0] sm:$0xff] }
  0xb5   :  { %158 = vst [vmem:[%s682_s2 + $0xb0] sm:$0xff] %v108_v12  ;;  %v114_v4 = vadd.f32 %v238_v10, %v39_v23 }
  0xbc   :  { %v40_v26 = vld [vmem:[%s680_s0 + $0xe8] sm:$0xff] }
  0xbd   :  { %159 = vst [vmem:[%s682_s2 + $0xb8] sm:$0xff] %v109_v16  ;;  %v115_v6 = vadd.f32 %v250_v13, %v40_v26 }
  0xc4   :  { %v41_v28 = vld [vmem:[%s680_s0 + $0xf0] sm:$0xff] }
  0xc5   :  { %160 = vst [vmem:[%s682_s2 + $0xc0] sm:$0x7f] %v110_v18  ;;  %v116_v10 = vadd.f32 %v258_v15, %v41_v28 }
  0xcc   :  { %v42_v29 = vld [vmem:[%s680_s0 + $0xf8] sm:$0xff] }
  0xcd   :  { %161 = vst [vmem:[%s682_s2 + $0xc8] sm:$0xff] %v111_v21  ;;  %v117_v13 = vadd.f32 %v271_v19, %v42_v29 }
  0xd4   :  { %v43_v31 = vld [vmem:[%s680_s0 + $0x100] sm:$0xff] }
  0xd5   :  { %162 = vst [vmem:[%s682_s2 + $0xd0] sm:$0xff] %v112_v25  ;;  %v118_v15 = vadd.f32 %v283_v22, %v43_v31 }
  0xdc   :  { %v44_v33 = vld [vmem:[%s680_s0 + $0x108] sm:$0xff] }
  0xdd   :  { %163 = vst [vmem:[%s682_s2 + $0xd8] sm:$0xff] %v113_v1  ;;  %v119_v19 = vadd.f32 %v291_v24, %v44_v33 }
  0xe4   :  { %v45_v34 = vld [vmem:[%s680_s0 + $0x110] sm:$0xff] }
  0xe5   :  { %164 = vst [vmem:[%s682_s2 + $0xe0] sm:$0xff] %v114_v4  ;;  %v120_v22 = vadd.f32 %v303_v27, %v45_v34 }
  0xec   :  { %v46_v36 = vld [vmem:[%s680_s0 + $0x118] sm:$0xff] }
  0xed   :  { %165 = vst [vmem:[%s682_s2 + $0xe8] sm:$0xff] %v115_v6  ;;  %v121_v24 = vadd.f32 %v315_v30, %v46_v36 }
  0xf4   :  { %v47_v37 = vld [vmem:[%s680_s0 + $0x120] sm:$0xff] }
  0xf5   :  { %166 = vst [vmem:[%s682_s2 + $0xf0] sm:$0xff] %v116_v10  ;;  %v122_v27 = vadd.f32 %v323_v32, %v47_v37 }
  0xfc   :  { %v48_v39 = vld [vmem:[%s680_s0 + $0x128] sm:$0xff] }
  0xfd   :  { %167 = vst [vmem:[%s682_s2 + $0xf8] sm:$0xff] %v117_v13  ;;  %v123_v30 = vadd.f32 %v335_v35, %v48_v39 }
 0x104   :  { %v49_v40 = vld [vmem:[%s680_s0 + $0x130] sm:$0xff] }
 0x105   :  { %168 = vst [vmem:[%s682_s2 + $0x100] sm:$0xff] %v118_v15  ;;  %v124_v32 = vadd.f32 %v347_v38, %v49_v40 }
 0x10c   :  { %v50_v42 = vld [vmem:[%s680_s0 + $0x138] sm:$0xff] }
 0x10d   :  { %169 = vst [vmem:[%s682_s2 + $0x108] sm:$0xff] %v119_v19  ;;  %v125_v35 = vadd.f32 %v359_v41, %v50_v42 }
 0x114   :  { %v51_v43 = vld [vmem:[%s680_s0 + $0x140] sm:$0xff] }
 0x115   :  { %170 = vst [vmem:[%s682_s2 + $0x110] sm:$0xff] %v120_v22  ;;  %v126_v38 = vadd.f32 %v371_v44, %v51_v43 }
 0x11c   :  { %v52_v45 = vld [vmem:[%s680_s0 + $0x148] sm:$0xff] }
 0x11d   :  { %171 = vst [vmem:[%s682_s2 + $0x118] sm:$0xff] %v121_v24  ;;  %v127_v41 = vadd.f32 %v383_v47, %v52_v45 }
 0x124   :  { %v53_v46 = vld [vmem:[%s680_s0 + $0x150] sm:$0xff] }
 0x125   :  { %172 = vst [vmem:[%s682_s2 + $0x120] sm:$0xff] %v122_v27  ;;  %v128_v44 = vadd.f32 %v395_v50, %v53_v46 }
 0x12c   :  { %v54_v48 = vld [vmem:[%s680_s0 + $0x158] sm:$0xff] }
 0x12d   :  { %173 = vst [vmem:[%s682_s2 + $0x128] sm:$0xff] %v123_v30  ;;  %v129_v47 = vadd.f32 %v407_v53, %v54_v48 }
 0x134   :  { %v55_v49 = vld [vmem:[%s680_s0 + $0x160] sm:$0xff] }
 0x135   :  { %174 = vst [vmem:[%s682_s2 + $0x130] sm:$0xff] %v124_v32  ;;  %v130_v50 = vadd.f32 %v419_v56, %v55_v49 }
 0x13c   :  { %v56_v51 = vld [vmem:[%s680_s0 + $0x168] sm:$0xff] }
 0x13d   :  { %175 = vst [vmem:[%s682_s2 + $0x138] sm:$0xff] %v125_v35  ;;  %v131_v53 = vadd.f32 %v431_v59, %v56_v51 }
 0x144   :  { %v57_v52 = vld [vmem:[%s680_s0 + $0x170] sm:$0xff] }
 0x145   :  { %176 = vst [vmem:[%s682_s2 + $0x140] sm:$0xff] %v126_v38  ;;  %v132_v56 = vadd.f32 %v443_v62, %v57_v52 }
 0x14c   :  { %v58_v54 = vld [vmem:[%s680_s0 + $0x178] sm:$0xff] }
 0x14d   :  { %177 = vst [vmem:[%s682_s2 + $0x148] sm:$0xff] %v127_v41  ;;  %v133_v58 = vadd.f32 %v455_v2, %v58_v54 }
 0x154   :  { %v59_v55 = vld [vmem:[%s680_s0 + $0x180] sm:$0xff] }
 0x155   :  { %178 = vst [vmem:[%s682_s2 + $0x150] sm:$0xff] %v128_v44  ;;  %v134_v59 = vadd.f32 %v467_v7, %v59_v55 }
 0x15c   :  { %v60_v57 = vld [vmem:[%s680_s0 + $0x188] sm:$0x7f] }
 0x15d   :  { %179 = vst [vmem:[%s682_s2 + $0x158] sm:$0xff] %v129_v47  ;;  %v135_v60 = vadd.f32 %v479_v11, %v60_v57 }
 0x15e   :  { %180 = vst [vmem:[%s682_s2 + $0x160] sm:$0xff] %v130_v50 }
 0x15f   :  { %181 = vst [vmem:[%s682_s2 + $0x168] sm:$0xff] %v131_v53 }
 0x160   :  { %182 = vst [vmem:[%s682_s2 + $0x170] sm:$0xff] %v132_v56 }
 0x161   :  { %183 = vst [vmem:[%s682_s2 + $0x178] sm:$0xff] %v133_v58 }
 0x162   :  { %184 = vst [vmem:[%s682_s2 + $0x180] sm:$0xff] %v134_v59 }
 0x163   :  { %185 = vst [vmem:[%s682_s2 + $0x188] sm:$0x7f] %v135_v60 }

</bundles_post_ra>
